<compile_context>
chip_gen: v7x
topology: tpu7x:2x2x1
jax: 0.10.0
libtpu: 0.0.40
codegen_flags: <defaults>
</compile_context>

<pallas_src>
import functools

import jax
import jax.numpy as jnp
import numpy as np
from jax import lax
from jax.experimental import pallas as pl
from jax.experimental.pallas import tpu as pltpu


# ----------------------------------------------------------------------------
# Fused kernel: one (batch, key-block) grid step.
#   scores[j, k] = w_v . tanh(W_q q[j'] + W_k k[k])   (computed lane-dense in K)
#   -> quirky masked_fill -> online softmax over key blocks -> @ values
# ----------------------------------------------------------------------------
def _fused_kernel(vl_ref, qt_ref, kt_ref, v_ref, wqt_ref, wkt_ref, wv_ref,
                  o_ref, m_sc, l_sc, acc_sc, *,
                  q_len, j_rows, kb_size, mask_mode):
    kb = pl.program_id(1)

    @pl.when(kb == 0)
    def _init():
        m_sc[...] = jnp.full_like(m_sc, -jnp.inf)
        l_sc[...] = jnp.zeros_like(l_sc)
        acc_sc[...] = jnp.zeros_like(acc_sc)

    # Projections on the MXU, transposed so the key axis sits on vreg lanes.
    # (qh_t is tiny; recomputing it per key block is cheaper than extra scratch.)
    qh_t = jnp.dot(wqt_ref[...], qt_ref[0], preferred_element_type=jnp.float32)  # (H, Q)
    kh_t = jnp.dot(wkt_ref[...], kt_ref[0], preferred_element_type=jnp.float32)  # (H, KB)

    # Score rows, one query at a time (Q is small for this module; Q == 1 in the
    # spec).  The H-contraction is an MXU matmul, not an XLU lane reduction, and
    # the score row comes out lane-dense in K.
    rows = []
    for q in range(q_len):                                   # static unroll
        feat_t = jnp.tanh(kh_t + qh_t[:, q:q + 1])           # (H, KB)
        rows.append(jnp.dot(wv_ref[...], feat_t,
                            preferred_element_type=jnp.float32))  # (1, KB)
    s = rows[0] if q_len == 1 else jnp.concatenate(rows, axis=0)  # (Q, KB)
    if j_rows != q_len:
        # torch.masked_fill (out of place) broadcasts X along the row axis.
        s = jnp.broadcast_to(s, (j_rows, kb_size))

    # masked_softmax quirk of the reference module: arange over X.size(1) (= Q).
    if mask_mode == "row":
        # Q == 1: the arange value is 0 everywhere -> a row is either fully
        # filled with -1e6 (iff valid_len[row] <= 0) or left untouched.
        row_masked = jnp.broadcast_to(vl_ref[...] <= 0, s.shape)
        s = jnp.where(row_masked, jnp.float32(-1000000.0), s)
    elif mask_mode == "key":
        # Q == K: the expanded arange lands on the key axis.
        gk = kb * kb_size + lax.broadcasted_iota(jnp.int32, (j_rows, kb_size), 1)
        s = jnp.where(gk >= vl_ref[...], jnp.float32(-1000000.0), s)
    # mask_mode == "none": valid_lens is None -> plain softmax.

    # Online (flash-style) softmax over key blocks, fused with the values bmm.
    m_prev = m_sc[...]
    m_new = jnp.maximum(m_prev, jnp.max(s, axis=-1, keepdims=True))
    alpha = jnp.exp(m_prev - m_new)
    p = jnp.exp(s - m_new)                                                  # (J, KB)
    l_sc[...] = alpha * l_sc[...] + jnp.sum(p, axis=-1, keepdims=True)
    acc_sc[...] = alpha * acc_sc[...] + jnp.dot(p, v_ref[0],
                                                preferred_element_type=jnp.float32)
    m_sc[...] = m_new

    @pl.when(kb == pl.num_programs(1) - 1)
    def _finalize():
        # approx=True would move the reciprocal fully onto the (idle) EUP slot,
        # at ~1e-4 relative error; kept exact to preserve f32 parity here.
        inv_l = pl.reciprocal(l_sc[...], approx=False)
        o_ref[0] = (acc_sc[...] * inv_l).astype(o_ref.dtype)


# ----------------------------------------------------------------------------
# Wrapper: layout plumbing + single fused pallas_call.
# ----------------------------------------------------------------------------
def additive_attention_forward(queries, keys, values, valid_lens, params):
    """Fused Pallas forward of AdditiveAttention (dropout = identity / eval)."""
    w_q, w_k, w_v = params                 # (Dq,H), (Dk,H), (1,H): Linear weights as x@W
    B, Q, Dq = queries.shape
    _, K, Dk = keys.shape
    _, _, Dv = values.shape
    H = w_q.shape[1]

    # ---- replicate the module's masked_softmax bookkeeping (shape-level) ----
    if valid_lens is None:
        J = Q
        mask_mode = "none"
        vl_rows = jnp.zeros((J, 1), jnp.int32)                    # unused
    else:
        assert valid_lens.ndim == 1, "only 1-D valid_lens (as in the module) supported"
        # torch.arange(X.size(1)).expand_as(X) requires Q == 1 or Q == K.
        assert Q == 1 or Q == K, "reference masked_softmax requires Q==1 or Q==K"
        # Row count after torch.masked_fill's out-of-place mask/X broadcasting.
        J = np.broadcast_shapes((B, Q, K), (B, 1))[1]
        # valid_lens.unsqueeze(-1) aligns its first axis with the broadcast row axis.
        vl_rows = jnp.broadcast_to(valid_lens.astype(jnp.int32)[:, None], (J, 1))
        mask_mode = "row" if Q == 1 else "key"

    # ---- layout plumbing: make the key axis lane-dense inside the kernel ----
    q_t = jnp.swapaxes(queries, 1, 2).astype(jnp.float32)         # (B, Dq, Q)
    k_t = jnp.swapaxes(keys, 1, 2).astype(jnp.float32)            # (B, Dk, K)
    v_f = values.astype(jnp.float32)                              # (B, K, Dv)
    wq_t = jnp.asarray(w_q, jnp.float32).T                        # (H, Dq)
    wk_t = jnp.asarray(w_k, jnp.float32).T                        # (H, Dk)
    wv_r = jnp.asarray(w_v, jnp.float32).reshape(1, H)            # (1, H)

    # ---- key-axis tiling: online softmax bounds VMEM to O(H*KB + J*KB) ----
    kb_size = 512 if (K > 512 and K % 512 == 0) else K
    kt = K // kb_size
    grid = (B, kt)

    # ---- explicit VMEM budget: double-buffered blocks + scratch + headroom ----
    def _padded_bytes(shape, dtype):
        s = list(shape)
        s[-1] = -(-s[-1] // 128) * 128
        if len(s) >= 2:
            s[-2] = -(-s[-2] // 8) * 8
        return int(np.prod(s)) * jnp.dtype(dtype).itemsize

    block_bytes = (
        _padded_bytes((J, 1), jnp.int32)
        + _padded_bytes((1, Dq, Q), jnp.float32)
        + _padded_bytes((1, Dk, kb_size), jnp.float32)
        + _padded_bytes((1, kb_size, Dv), jnp.float32)
        + _padded_bytes((H, Dq), jnp.float32)
        + _padded_bytes((H, Dk), jnp.float32)
        + _padded_bytes((1, H), jnp.float32)
        + _padded_bytes((1, J, Dv), jnp.float32)
    )
    scratch_bytes = 2 * _padded_bytes((J, 1), jnp.float32) + _padded_bytes((J, Dv), jnp.float32)
    vmem_limit = int(min(64 * 2**20,                      # fits v7x's smaller VMEM
                         max(8 * 2**20, 2 * block_bytes + scratch_bytes + 2 * 2**20)))

    kernel = functools.partial(_fused_kernel, q_len=Q, j_rows=J,
                               kb_size=kb_size, mask_mode=mask_mode)

    return pl.pallas_call(
        kernel,
        out_shape=jax.ShapeDtypeStruct((B, J, Dv), jnp.float32),
        grid=grid,
        in_specs=[
            pl.BlockSpec((J, 1), lambda b, k: (0, 0)),               # per-row valid lens
            pl.BlockSpec((1, Dq, Q), lambda b, k: (b, 0, 0)),        # queries^T
            pl.BlockSpec((1, Dk, kb_size), lambda b, k: (b, 0, k)),  # keys^T   (K tiled)
            pl.BlockSpec((1, kb_size, Dv), lambda b, k: (b, k, 0)),  # values   (K tiled)
            pl.BlockSpec((H, Dq), lambda b, k: (0, 0)),              # W_q^T
            pl.BlockSpec((H, Dk), lambda b, k: (0, 0)),              # W_k^T
            pl.BlockSpec((1, H), lambda b, k: (0, 0)),               # w_v row
        ],
        out_specs=pl.BlockSpec((1, J, Dv), lambda b, k: (b, 0, 0)),
        scratch_shapes=[
            pltpu.VMEM((J, 1), jnp.float32),    # running row max   m
            pltpu.VMEM((J, 1), jnp.float32),    # running denom     l
            pltpu.VMEM((J, Dv), jnp.float32),   # running numerator acc
        ],
        compiler_params=pltpu.CompilerParams(
            dimension_semantics=("parallel", "arbitrary"),
            vmem_limit_bytes=vmem_limit,
        ),
    )(vl_rows, q_t, k_t, v_f, wq_t, wk_t, wv_r)
    # TODO(synk): nn.Dropout on the attention weights is stochastic; it is
    # treated as identity here (inference / eval-mode semantics).


# ----------------------------------------------------------------------------
# Pure-JAX reference: literal transcription of the PyTorch forward (including
# its masked_softmax's arange over X.size(1) and masked_fill broadcasting).
# ----------------------------------------------------------------------------
def _masked_softmax_reference(X, valid_lens):
    if valid_lens is None:
        return jax.nn.softmax(X, axis=-1)
    arange = jnp.arange(X.shape[1])
    left = jnp.broadcast_to(arange, X.shape)              # torch .expand_as(X)
    mask = left >= valid_lens[:, None]                    # broadcasts like torch
    Xf = jnp.where(mask, jnp.float32(-1000000.0), X)      # out-of-place masked_fill
    return jax.nn.softmax(Xf, axis=-1)


def reference(queries, keys, values, valid_lens, params):
    w_q, w_k, w_v = params
    qh = queries @ w_q                                            # (B, Q, H)
    kh = keys @ w_k                                               # (B, K, H)
    feat = jnp.tanh(qh[:, :, None, :] + kh[:, None, :, :])        # (B, Q, K, H)
    scores = jnp.sum(feat * w_v.reshape(1, 1, 1, -1), axis=-1)    # (B, Q, K)
    attn = _masked_softmax_reference(scores, valid_lens)
    return jnp.einsum("bjk,bkd->bjd", attn, values)


if __name__ == "__main__":
    # Shapes from the module's own example tensors:
    #   queries (2, 1, 20), keys (2, 10, 2), values (2, 10, 4), valid_lens (2,)
    B, Q, K = 2, 1, 10
    Dq, Dk, Dv, H = 20, 2, 4, 8              # num_hiddens = 8, dropout = 0.1 (identity)

    key = jax.random.PRNGKey(0)
    k_q, k_wq, k_wk, k_wv = jax.random.split(key, 4)

    queries = jax.random.normal(k_q, (B, Q, Dq), dtype=jnp.float32)
    keys = jnp.ones((B, K, Dk), dtype=jnp.float32)
    values = jnp.tile(jnp.arange(K * Dv, dtype=jnp.float32).reshape(1, K, Dv), (B, 1, 1))
    valid_lens = jnp.array([2, 6], dtype=jnp.int32)

    # Deterministic nn.Linear-style init (U(+-1/sqrt(fan_in))), stored as (in, out).
    def lin_init(k, fan_in, fan_out):
        bound = 1.0 / float(np.sqrt(fan_in))
        return jax.random.uniform(k, (fan_in, fan_out), jnp.float32, -bound, bound)

    w_q = lin_init(k_wq, Dq, H)              # W_q weight, stored transposed (in, out)
    w_k = lin_init(k_wk, Dk, H)
    w_v = lin_init(k_wv, H, 1).T             # w_v weight as a (1, H) row

    params = (w_q, w_k, w_v)
    out = additive_attention_forward(queries, keys, values, valid_lens, params)
    out = jax.block_until_ready(out)

    ref = reference(queries, keys, values, valid_lens, params)
    assert out.shape == ref.shape, (out.shape, ref.shape)
    np.testing.assert_allclose(np.asarray(out), np.asarray(ref), rtol=1e-4, atol=1e-4)

    print("KERNEL_OK")
</pallas_src>

<mosaic_0001>
module attributes {stable_mosaic.version = 11 : i64} {
  func.func @_fused_kernel(%arg0: i32, %arg1: i32, %arg2: memref<2x1xi32, #tpu.memory_space<vmem>>, %arg3: memref<1x20x1xf32, #tpu.memory_space<vmem>>, %arg4: memref<1x2x10xf32, #tpu.memory_space<vmem>>, %arg5: memref<1x10x4xf32, #tpu.memory_space<vmem>>, %arg6: memref<8x20xf32, #tpu.memory_space<vmem>>, %arg7: memref<8x2xf32, #tpu.memory_space<vmem>>, %arg8: memref<1x8xf32, #tpu.memory_space<vmem>>, %arg9: memref<1x2x4xf32, #tpu.memory_space<vmem>>, %arg10: memref<2x1xf32, #tpu.memory_space<vmem>>, %arg11: memref<2x1xf32, #tpu.memory_space<vmem>>, %arg12: memref<2x4xf32, #tpu.memory_space<vmem>>) attributes {dimension_semantics = [#tpu.dimension_semantics<parallel>, #tpu.dimension_semantics<arbitrary>], iteration_bounds = array<i64: 2, 1>, scalar_prefetch = 0 : i64, scratch_operands = 3 : i64, tpu.core_type = #tpu.core_type<tc>, window_params = [{pipeline_mode = #tpu.pipeline_mode<synchronous>, transform_indices = @transform_0, window_bounds = array<i64: 2, 1>}, {transform_indices = @transform_1, window_bounds = array<i64: 1, 20, 1>}, {transform_indices = @transform_2, window_bounds = array<i64: 1, 2, 10>}, {transform_indices = @transform_3, window_bounds = array<i64: 1, 10, 4>}, {pipeline_mode = #tpu.pipeline_mode<synchronous>, transform_indices = @transform_4, window_bounds = array<i64: 8, 20>}, {pipeline_mode = #tpu.pipeline_mode<synchronous>, transform_indices = @transform_5, window_bounds = array<i64: 8, 2>}, {pipeline_mode = #tpu.pipeline_mode<synchronous>, transform_indices = @transform_6, window_bounds = array<i64: 1, 8>}, {transform_indices = @transform_7, window_bounds = array<i64: 1, 2, 4>}]} {
    %c0_i32 = arith.constant 0 : i32
    %0 = arith.cmpi eq, %arg1, %c0_i32 : i32
    %1 = arith.extui %0 : i1 to i32
    %c0_i32_0 = arith.constant 0 : i32
    %2 = arith.cmpi ne, %1, %c0_i32_0 : i32
    scf.if %2 {
      %cst_38 = arith.constant 0xFF800000 : f32
      %52 = vector.broadcast %cst_38 : f32 to vector<2x1xf32>
      %c0_39 = arith.constant 0 : index
      %c0_40 = arith.constant 0 : index
      %53 = vector.load %arg10[%c0_39, %c0_40] : memref<2x1xf32, #tpu.memory_space<vmem>>, vector<2x1xf32>
      tpu.vector_store %arg10[%c0_39, %c0_40], %52 {strides = array<i32>} : memref<2x1xf32, #tpu.memory_space<vmem>>, vector<2x1xf32>,
      %cst_41 = arith.constant 0.000000e+00 : f32
      %54 = vector.broadcast %cst_41 : f32 to vector<2x1xf32>
      %c0_42 = arith.constant 0 : index
      %c0_43 = arith.constant 0 : index
      %55 = vector.load %arg11[%c0_42, %c0_43] : memref<2x1xf32, #tpu.memory_space<vmem>>, vector<2x1xf32>
      tpu.vector_store %arg11[%c0_42, %c0_43], %54 {strides = array<i32>} : memref<2x1xf32, #tpu.memory_space<vmem>>, vector<2x1xf32>,
      %cst_44 = arith.constant 0.000000e+00 : f32
      %56 = vector.broadcast %cst_44 : f32 to vector<2x4xf32>
      %c0_45 = arith.constant 0 : index
      %c0_46 = arith.constant 0 : index
      %57 = vector.load %arg12[%c0_45, %c0_46] : memref<2x4xf32, #tpu.memory_space<vmem>>, vector<2x4xf32>
      tpu.vector_store %arg12[%c0_45, %c0_46], %56 {strides = array<i32>} : memref<2x4xf32, #tpu.memory_space<vmem>>, vector<2x4xf32>,
    } else {
    }
    %c0 = arith.constant 0 : index
    %c0_1 = arith.constant 0 : index
    %3 = vector.load %arg6[%c0, %c0_1] : memref<8x20xf32, #tpu.memory_space<vmem>>, vector<8x20xf32>
    %c0_2 = arith.constant 0 : index
    %c0_3 = arith.constant 0 : index
    %c0_4 = arith.constant 0 : index
    %4 = vector.load %arg3[%c0_2, %c0_3, %c0_4] : memref<1x20x1xf32, #tpu.memory_space<vmem>>, vector<1x20x1xf32>
    %5 = vector.shape_cast %4 : vector<1x20x1xf32> to vector<20x1xf32>
    %cst = arith.constant dense<0.000000e+00> : vector<8x1xf32>
    %6 = tpu.matmul %3, %5, %cst {dimension_numbers = #tpu.dot_dimension_numbers<[1], [0], [0], [1], [0, 0, 1, 1], [], []>} : vector<8x20xf32>, vector<20x1xf32>, vector<8x1xf32> -> vector<8x1xf32>
    %c0_5 = arith.constant 0 : index
    %c0_6 = arith.constant 0 : index
    %7 = vector.load %arg7[%c0_5, %c0_6] : memref<8x2xf32, #tpu.memory_space<vmem>>, vector<8x2xf32>
    %c0_7 = arith.constant 0 : index
    %c0_8 = arith.constant 0 : index
    %c0_9 = arith.constant 0 : index
    %8 = vector.load %arg4[%c0_7, %c0_8, %c0_9] : memref<1x2x10xf32, #tpu.memory_space<vmem>>, vector<1x2x10xf32>
    %9 = vector.shape_cast %8 : vector<1x2x10xf32> to vector<2x10xf32>
    %cst_10 = arith.constant dense<0.000000e+00> : vector<8x10xf32>
    %10 = tpu.matmul %7, %9, %cst_10 {dimension_numbers = #tpu.dot_dimension_numbers<[1], [0], [0], [1], [0, 0, 1, 1], [], []>} : vector<8x2xf32>, vector<2x10xf32>, vector<8x10xf32> -> vector<8x10xf32>
    %11 = vector.broadcast %6 : vector<8x1xf32> to vector<8x10xf32>
    %12 = arith.addf %10, %11 : vector<8x10xf32>
    %13 = math.tanh %12 : vector<8x10xf32>
    %c0_11 = arith.constant 0 : index
    %c0_12 = arith.constant 0 : index
    %14 = vector.load %arg8[%c0_11, %c0_12] : memref<1x8xf32, #tpu.memory_space<vmem>>, vector<1x8xf32>
    %cst_13 = arith.constant dense<0.000000e+00> : vector<1x10xf32>
    %15 = tpu.matmul %14, %13, %cst_13 {dimension_numbers = #tpu.dot_dimension_numbers<[1], [0], [0], [1], [0, 0, 1, 1], [], []>} : vector<1x8xf32>, vector<8x10xf32>, vector<1x10xf32> -> vector<1x10xf32>
    %16 = vector.shape_cast %15 : vector<1x10xf32> to vector<1x10xf32>
    %17 = vector.broadcast %16 : vector<1x10xf32> to vector<2x10xf32>
    %c0_14 = arith.constant 0 : index
    %c0_15 = arith.constant 0 : index
    %18 = vector.load %arg2[%c0_14, %c0_15] : memref<2x1xi32, #tpu.memory_space<vmem>>, vector<2x1xi32>
    %c0_i32_16 = arith.constant 0 : i32
    %19 = vector.broadcast %c0_i32_16 : i32 to vector<2x1xi32>
    %20 = arith.cmpi sle, %18, %19 : vector<2x1xi32>
    %21 = vector.shape_cast %20 : vector<2x1xi1> to vector<2x1xi1>
    %22 = vector.broadcast %21 : vector<2x1xi1> to vector<2x10xi1>
    %cst_17 = arith.constant -1.000000e+06 : f32
    %23 = vector.broadcast %cst_17 : f32 to vector<2x10xf32>
    %24 = arith.select %22, %23, %17 : vector<2x10xi1>, vector<2x10xf32>
    %c0_18 = arith.constant 0 : index
    %c0_19 = arith.constant 0 : index
    %25 = vector.load %arg10[%c0_18, %c0_19] : memref<2x1xf32, #tpu.memory_space<vmem>>, vector<2x1xf32>
    %cst_20 = arith.constant dense<0xFF800000> : vector<2xf32>
    %26 = vector.multi_reduction <maximumf>, %24, %cst_20 [1] : vector<2x10xf32> to vector<2xf32>
    %27 = vector.shape_cast %26 : vector<2xf32> to vector<2x1xf32>
    %28 = arith.maximumf %25, %27 : vector<2x1xf32>
    %29 = arith.subf %25, %28 : vector<2x1xf32>
    %30 = math.exp %29 : vector<2x1xf32>
    %31 = vector.broadcast %28 : vector<2x1xf32> to vector<2x10xf32>
    %32 = arith.subf %24, %31 : vector<2x10xf32>
    %33 = math.exp %32 : vector<2x10xf32>
    %c0_21 = arith.constant 0 : index
    %c0_22 = arith.constant 0 : index
    %34 = vector.load %arg11[%c0_21, %c0_22] : memref<2x1xf32, #tpu.memory_space<vmem>>, vector<2x1xf32>
    %35 = arith.mulf %30, %34 : vector<2x1xf32>
    %cst_23 = arith.constant dense<0.000000e+00> : vector<2xf32>
    %36 = vector.multi_reduction <add>, %33, %cst_23 [1] : vector<2x10xf32> to vector<2xf32>
    %37 = vector.shape_cast %36 : vector<2xf32> to vector<2x1xf32>
    %38 = arith.addf %35, %37 : vector<2x1xf32>
    %c0_24 = arith.constant 0 : index
    %c0_25 = arith.constant 0 : index
    %39 = vector.load %arg11[%c0_24, %c0_25] : memref<2x1xf32, #tpu.memory_space<vmem>>, vector<2x1xf32>
    tpu.vector_store %arg11[%c0_24, %c0_25], %38 {strides = array<i32>} : memref<2x1xf32, #tpu.memory_space<vmem>>, vector<2x1xf32>,
    %c0_26 = arith.constant 0 : index
    %c0_27 = arith.constant 0 : index
    %40 = vector.load %arg12[%c0_26, %c0_27] : memref<2x4xf32, #tpu.memory_space<vmem>>, vector<2x4xf32>
    %41 = vector.broadcast %30 : vector<2x1xf32> to vector<2x4xf32>
    %42 = arith.mulf %41, %40 : vector<2x4xf32>
    %c0_28 = arith.constant 0 : index
    %c0_29 = arith.constant 0 : index
    %c0_30 = arith.constant 0 : index
    %43 = vector.load %arg5[%c0_28, %c0_29, %c0_30] : memref<1x10x4xf32, #tpu.memory_space<vmem>>, vector<1x10x4xf32>
    %44 = vector.shape_cast %43 : vector<1x10x4xf32> to vector<10x4xf32>
    %cst_31 = arith.constant dense<0.000000e+00> : vector<2x4xf32>
    %45 = tpu.matmul %33, %44, %cst_31 {dimension_numbers = #tpu.dot_dimension_numbers<[1], [0], [0], [1], [0, 0, 1, 1], [], []>} : vector<2x10xf32>, vector<10x4xf32>, vector<2x4xf32> -> vector<2x4xf32>
    %46 = arith.addf %42, %45 : vector<2x4xf32>
    %c0_32 = arith.constant 0 : index
    %c0_33 = arith.constant 0 : index
    %47 = vector.load %arg12[%c0_32, %c0_33] : memref<2x4xf32, #tpu.memory_space<vmem>>, vector<2x4xf32>
    tpu.vector_store %arg12[%c0_32, %c0_33], %46 {strides = array<i32>} : memref<2x4xf32, #tpu.memory_space<vmem>>, vector<2x4xf32>,
    %c0_34 = arith.constant 0 : index
    %c0_35 = arith.constant 0 : index
    %48 = vector.load %arg10[%c0_34, %c0_35] : memref<2x1xf32, #tpu.memory_space<vmem>>, vector<2x1xf32>
    tpu.vector_store %arg10[%c0_34, %c0_35], %28 {strides = array<i32>} : memref<2x1xf32, #tpu.memory_space<vmem>>, vector<2x1xf32>,
    %c0_i32_36 = arith.constant 0 : i32
    %49 = arith.cmpi eq, %arg1, %c0_i32_36 : i32
    %50 = arith.extui %49 : i1 to i32
    %c0_i32_37 = arith.constant 0 : i32
    %51 = arith.cmpi ne, %50, %c0_i32_37 : i32
    scf.if %51 {
      %c0_38 = arith.constant 0 : index
      %c0_39 = arith.constant 0 : index
      %52 = vector.load %arg11[%c0_38, %c0_39] : memref<2x1xf32, #tpu.memory_space<vmem>>, vector<2x1xf32>
      %53 = tpu.reciprocal %52 : vector<2x1xf32> -> vector<2x1xf32>
      %c0_40 = arith.constant 0 : index
      %c0_41 = arith.constant 0 : index
      %54 = vector.load %arg12[%c0_40, %c0_41] : memref<2x4xf32, #tpu.memory_space<vmem>>, vector<2x4xf32>
      %55 = vector.broadcast %53 : vector<2x1xf32> to vector<2x4xf32>
      %56 = arith.mulf %54, %55 : vector<2x4xf32>
      %c0_42 = arith.constant 0 : index
      %c0_43 = arith.constant 0 : index
      %c0_44 = arith.constant 0 : index
      %57 = vector.load %arg9[%c0_42, %c0_43, %c0_44] : memref<1x2x4xf32, #tpu.memory_space<vmem>>, vector<1x2x4xf32>
      %58 = vector.shape_cast %57 : vector<1x2x4xf32> to vector<2x4xf32>
      %59 = vector.shape_cast %56 : vector<2x4xf32> to vector<1x2x4xf32>
      tpu.vector_store %arg9[%c0_42, %c0_43, %c0_44], %59 {strides = array<i32>} : memref<1x2x4xf32, #tpu.memory_space<vmem>>, vector<1x2x4xf32>,
    } else {
    }
    return
  }
  func.func @transform_0(%arg0: i32, %arg1: i32) -> (i32, i32) {
    %c0_i32 = arith.constant 0 : i32
    %c0_i32_0 = arith.constant 0 : i32
    %c0_i32_1 = arith.constant 0 : i32
    return %c0_i32, %c0_i32_0 : i32, i32
  }
  func.func @transform_1(%arg0: i32, %arg1: i32) -> (i32, i32, i32) {
    %c0_i32 = arith.constant 0 : i32
    %c0_i32_0 = arith.constant 0 : i32
    %c0_i32_1 = arith.constant 0 : i32
    return %arg0, %c0_i32, %c0_i32_0 : i32, i32, i32
  }
  func.func @transform_2(%arg0: i32, %arg1: i32) -> (i32, i32, i32) {
    %c0_i32 = arith.constant 0 : i32
    %c0_i32_0 = arith.constant 0 : i32
    return %arg0, %c0_i32, %arg1 : i32, i32, i32
  }
  func.func @transform_3(%arg0: i32, %arg1: i32) -> (i32, i32, i32) {
    %c0_i32 = arith.constant 0 : i32
    %c0_i32_0 = arith.constant 0 : i32
    return %arg0, %arg1, %c0_i32 : i32, i32, i32
  }
  func.func @transform_4(%arg0: i32, %arg1: i32) -> (i32, i32) {
    %c0_i32 = arith.constant 0 : i32
    %c0_i32_0 = arith.constant 0 : i32
    %c0_i32_1 = arith.constant 0 : i32
    return %c0_i32, %c0_i32_0 : i32, i32
  }
  func.func @transform_5(%arg0: i32, %arg1: i32) -> (i32, i32) {
    %c0_i32 = arith.constant 0 : i32
    %c0_i32_0 = arith.constant 0 : i32
    %c0_i32_1 = arith.constant 0 : i32
    return %c0_i32, %c0_i32_0 : i32, i32
  }
  func.func @transform_6(%arg0: i32, %arg1: i32) -> (i32, i32) {
    %c0_i32 = arith.constant 0 : i32
    %c0_i32_0 = arith.constant 0 : i32
    %c0_i32_1 = arith.constant 0 : i32
    return %c0_i32, %c0_i32_0 : i32, i32
  }
  func.func @transform_7(%arg0: i32, %arg1: i32) -> (i32, i32, i32) {
    %c0_i32 = arith.constant 0 : i32
    %c0_i32_0 = arith.constant 0 : i32
    %c0_i32_1 = arith.constant 0 : i32
    return %arg0, %c0_i32, %c0_i32_0 : i32, i32, i32
  }
}

</mosaic_0001>

<bundles_post_ra>
// kernel: tpu_custom_call.1
= control target key start
LH: loop header
LB: loop body
LE: loop exit
PB: predicated region body
PF: predicated region fallthrough
CT: control target
= control target key end

     0   :  { %12 = vsyncpa [#allocation6], 0  ;;  %s1283_s0 = inlined_call_operand.vmem [shape: s32[2,1], index: 0, kind: input, shape index: {}]   ;;  %s1284_s1 = inlined_call_operand.vmem [shape: f32[2,20,1], index: 1, kind: input, shape index: {}]   ;;  %s1285_s2 = inlined_call_operand.vmem [shape: f32[2,2,10], index: 2, kind: input, shape index: {}]   ;;  %s1286_s3 = inlined_call_operand.vmem [shape: f32[2,10,4], index: 3, kind: input, shape index: {}]   ;;  %s1287_s4 = inlined_call_operand.vmem [shape: f32[8,20], index: 4, kind: input, shape index: {}]   ;;  %s1288_s5 = inlined_call_operand.vmem [shape: f32[8,2], index: 5, kind: input, shape index: {}]   ;;  %s1289_s6 = inlined_call_operand.vmem [shape: f32[1,8], index: 6, kind: input, shape index: {}]   ;;  %s1290_s7 = inlined_call_operand.hbm [shape: f32[2,2,4], index: 7, kind: output, shape index: {}]  }
   0x1   :  { %14 = vsyncpa [#allocation6 + $0x1], 0  ;;  %s1124_s24 = smov 0   ;;  %s1126_s25 = smov 0  }
   0x2   :  { %s1128_s26 = smov 0   ;;  %s1130_s27 = smov 0  }
   0x3   :  { %s1132_s28 = smov 0   ;;  %s1134_s29 = smov 0  }
   0x4 LB: > { %s859_s30 = sadd.s32 4294967295, %s1075_s29   ;;  %s860_s8 = sadd.s32 4294967294, %s1075_s29   ;;  %s1075_s29 = sphi %s1134_s29, %s20_s29   ;;  %s1071_s28 = sphi %s1132_s28, %s1297_s28   ;;  %s1067_s27 = sphi %s1130_s27, %s1296_s27   ;;  %s1063_s26 = sphi %s1128_s26, %s1295_s26   ;;  %s1059_s25 = sphi %s1126_s25, %s1294_s25   ;;  %s1055_s24 = sphi %s1124_s24, %s1293_s24  }
   0x5   : > { %s32_s9 = sadd.s32 1, %s1071_s28  ;;  %s205_s10 = sadd.s32 1, %s1063_s26 }
   0x6   : > { %p34_p0 = scmp.ge.s32.totalorder %s32_s9, 2  ;;  %p215_p1 = scmp.ne.s32.totalorder %s1063_s26, %s1059_s25 }
   0x7   : > { %p216_p2 = scmp.eq.s32.totalorder %s859_s30, 1  ;;  %p221_p3 = scmp.ne.s32.totalorder %s1059_s25, %s1055_s24 }
   0x8   : > { %s1299_s9 = smov (%p34_p0, %s32_s9), 0  ;;  %p222_p5 = scmp.eq.s32.totalorder %s860_s8, 1 }
   0x9   : > { %p1164_p4 = por %p216_p2, %p215_p1  ;;  %s202_s12 = ssub.s32 %s1071_s28, %s1299_s9 }
   0xa   : > { %p863_p6 = scmp.ge.s32.totalorder %s1075_s29, 1  ;;  %p203_p7 = scmp.eq.s32.totalorder %s202_s12, 0 }
   0xb   : > { %p1171_p8 = por %p222_p5, %p221_p3  ;;  %p283_p9 = scmp.lt.s32.totalorder %s1075_s29, 3 }
   0xc   : > { %s1177_s14 = scalar_select %p203_p7, %s1063_s26, %s205_s10  }
   0xd   : > { %p284_p10 = pnand %p863_p6, %p283_p9 }
   0xe   : > { %p331_p11 = scmp.lt.s32.totalorder (!%p284_p10), %s1067_s27, 1  ;;  %v1077_v0 = vmov (!%p284_p10), 0.0|0.0   ;;  %vm1078_vm0 = vmmov (!%p284_p10), 0   ;;  %v1079_v1 = vmov (!%p284_p10), 0.0   ;;  %v1080_v2 = vmov (!%p284_p10), 0   ;;  %v444_v3 = vld [vmem:[%s1288_s5] sm:$0xff] (!%p284_p10) }
   0xf   : > { %287 = sbr.rel (%p284_p10) target bundleno = 1200 (0x4b0), region = 48  ;;  %918 = vmatprep.subr.bf16.mxu0 (!%p284_p10), %v1077_v0  ;;  %898 = vmatprep.mubr.msk.f32.mxu0 (!%p284_p10), %vm1078_vm0, %v1079_v1  ;;  %vm455_vm1 = vcmask (!%p284_p10), 1041408   ;;  %vm451_vm2 = vcmask (!%p284_p10), 15360   ;;  %vm370_vm3 = vcmask (!%p284_p10), 1043456   ;;  %v362_v9 = vld [vmem:[%s1287_s4] sm:$0xff] (!%p284_p10)  ;;  %vm366_vm4 = vcmask (!%p284_p10), 162816  }
  0x10   : > { %901 = vmatprep.subr.mxu1 (!%p284_p10), %v1079_v1  ;;  %903 = vmatprep.mubr.msk.f32.mxu1 (!%p284_p10), %vm1078_vm0, %v1079_v1  ;;  %v609_v12 = vld [vmem:[%s1283_s0] sm:$0x3] (!%p284_p10)  ;;  %vm531_vm6 = vcmask (!%p284_p10), 64512   ;;  %vm357_vm7 = vcmask (!%p284_p10), 1024   ;;  %v1081_v20 = vmov (!%p284_p10), -inf   ;;  %v605_v21 = vlaneseq (!%p284_p10) }
  0x11   : > { %987 = vset.pattern.permute.xlu0 (!%p284_p10), %v1080_v2  ;;  %988 = vset.pattern.permute.xlu1 (!%p284_p10), %v1080_v2  ;;  %vm610_vm5 = vcmp.le.s32.totalorder (!%p284_p10), %v609_v12, 0  ;;  %v530_v18 = vld [vmem:[%s1289_s6] sm:$0x1] (!%p284_p10)  ;;  %358 = vst.msk [vmem:[#allocation2] sm:$0x3] (!%p284_p10), %vm357_vm7, %v1081_v20  ;;  %vm618_vm8 = vcmask (!%p284_p10), 74752  }
  0x12   : > { %v611_v15 = vsel (!%p284_p10), %vm610_vm5, 1, %v1080_v2  ;;  %359 = vst.msk [vmem:[#allocation3] sm:$0x3] (!%p284_p10), %vm357_vm7, %v1079_v1  ;;  %v606_v22 = vshrl.u32 (!%p284_p10), %v605_v21, 7  ;;  %vm360_vm10 = vcmask (!%p284_p10), 25600   ;;  %vm1082_vm11 = vmmov (!%p284_p10), 1  }
  0x13   : > { %361 = vst.msk [vmem:[#allocation4] sm:$0x3] (!%p284_p10), %vm360_vm10, %v1079_v1  ;;  %vm923_vm12 = vmpackc.low (!%p284_p10), %vm455_vm1, %vm1082_vm11  ;;  %vm651_vm13 = vcmask (!%p284_p10), 80896  }
  0x14   : > { %v607_v23 = vsub.s32 (!%p284_p10), 0, %v606_v22 }
  0x16   : > { %s1183_s15 = scalar_select %p331_p11, %s1067_s27, 1 }
  0x18   : > { %s925_s16 = smul.u32 24, %s1183_s15  ;;  %s866_s17 = sshll.u32 %s1183_s15, 1  ;;  %v617_v30 = vld [vmem:[#allocation2] sm:$0x3] }
  0x19   : > { %s342_s20 = scalar_lea.vmem %s1285_s2, %s866_s17  ;;  %v634_v44 = vld [vmem:[#allocation3] sm:$0x3] }
  0x1a   : > { %s335_s8 = scalar_lea.vmem %s1284_s1, %s925_s16  ;;  %v445_v4 = vld [vmem:[%s342_s20] sm:$0x3]  ;;  %s880_s20 = sshll.u32 %s1183_s15, 4  ;;  %v642_v50 = vld [vmem:[#allocation4] sm:$0x3] }
  0x1b   : > { %v363_v5 = vld [vmem:[%s335_s8] sm:$0xff]  ;;  %v364_v6 = vld [vmem:[%s335_s8 + $0x8] sm:$0xff]  ;;  %902 = vmatpush3.msk.msra.mxu1 %vm455_vm1, %v445_v4  ;;  %v365_v8 = vld [vmem:[%s335_s8 + $0x10] sm:$0xf]  ;;  %s351_s23 = scalar_lea.vmem %s1286_s3, %s880_s20  ;;  %s328_s15 = sand.u32 1, %s1059_s25  }
  0x1c   : > { %v919_v7 = vpack.c.bf16 %v364_v6, %v363_v5  ;;  %904 = vmatmul.mubr.msk.f32.vlgmr.msra.gmra.mrb[0].mxu1 %vm451_vm2, %v444_v3  ;;  %906 = vmatprep.subr.mxu1 %v1079_v1  ;;  %v649_v35 = vld [vmem:[%s351_s23] sm:$0xff]  ;;  %v650_v36 = vld [vmem:[%s351_s23 + $0x8] sm:$0x3]  ;;  %s864_s30 = sshll.u32 %s328_s15, 1  ;;  %s877_s8 = sshll.u32 %s1067_s27, 5 }
  0x1d   : > { %908 = vmatprep.mubr.msk.f32.mxu1 %vm1078_vm0, %v1079_v1  ;;  %v922_v37 = vpack.c.bf16 %v650_v36, %v649_v35  ;;  %s330_s10 = scalar_lea.vmem [#allocation5], %s864_s30  ;;  %s1235_s18 = scalar_lea.hbm %s1290_s7, %s877_s8 }
  0x1e   : > { %920 = vmatpush3.bf16.msra.mxu0 %v919_v7  ;;  %s759_s12 = sshll.u32 %s330_s10, 4  ;;  %s746_s19 = scalar_lea.sflag [#allocation6], %s328_s15  ;;  %s1237_s12 = int_to_ptr.vmem [resolvable:$true] %s759_s12 }
  0x1f   : > { %896 = vmatprep.subr.mxu0 %v1079_v1  ;;  %s997_s20 = scalar_lea.vmem %s1237_s12, 32  ;;  %s1083_s27 = smov [#allocation5]  }
  0x20   : > { %p998_p12 = scmp.ne.s32.totalorder %s1237_s12, %s997_s20  ;;  %s1001_s21 = sshll.u32 %s1083_s27, 4  ;;  %s1002_s21 = int_to_ptr.vmem [resolvable:$false] %s1001_s21 }
  0x21   : > { %s1003_s22 = scalar_lea.vmem %s1002_s21, 64  ;;  %p1004_p1 = scmp.lt.s32.totalorder %s1237_s12, %s1002_s21 }
  0x22   : > { %897 = vmatpush3.msk.msra.mxu0 %vm370_vm3, %v365_v8  ;;  %p999_p13 = pnand %p998_p12, %p1164_p4  ;;  %p1005_p2 = scmp.lt.s32.totalorder %s1003_s22, %s997_s20 }
  0x23   : > { %899 = vmatmul.mubr.msk.f32.vlgmr.msra.gmra.mrb[0].mxu0 %vm366_vm4, %v362_v9  ;;  %921 = vmatprep.subr.bf16.mxu0 %v1077_v0 }
  0x24   : > { %915 = vmatprep.mubr.msk.f32.mxu0 %vm1078_vm0, %v1079_v1  ;;  %924 = vmatpush3.bf16.msk.msra.mxu0 %vm923_vm12, %v922_v37  ;;  %p1000_p0 = pneg %p999_p13  ;;  %p1006_p3 = por %p1005_p2, %p1004_p1 }
  0x26   : > { %p1007_p5 = pnand %p1006_p3, %p1000_p0 }
  0xef   : > { %v525_v10 = vpop.f32.mrb[0].mxu1 }
  0xf0   : > { %v905_v11 = vpop.f32.mrb[1].mxu1 }
  0xf6   : > { %v440_v13 = vpop.f32.mrb[0].mxu0 }
  0xf7   : > { %448 = vperm.xlu0 %987, %v440_v13   ;;  %v900_v14 = vpop.f32.mrb[1].mxu0 }
  0xfb   : > { %613 = vperm.xlu0 %987, %v611_v15  }
 0x176   : > { %v449_v16 = vpop.permute.xlu0 %448 }
 0x177   : > { %v526_v17 = vadd.f32 %v525_v10, %v449_v16 }
 0x179   : > { %989 = vtanh.f32 %v526_v17 }
 0x17a   : > { %v614_v24 = vpop.permute.xlu0 %613 }
 0x17b   : > { %vm615_vm9 = vcmp.eq.s32.totalorder %v614_v24, 1 }
 0x183   : > { %v990_v19 = vpop.eup %989 }
 0x184   : > { %907 = vmatpush3.msra.mxu1 %v990_v19 }
 0x185   : > { %909 = vmatmul.mubr.msk.f32.vlgmr.msra.gmra.mrb[2].mxu1 %vm531_vm6, %v530_v18 }
 0x258   : > { %v601_v25 = vpop.f32.mrb[2].mxu1 }
 0x259   : > { %v608_v26 = vrot.slane %v601_v25, %v607_v23  ;;  %v910_v27 = vpop.f32.mrb[3].mxu1 }
 0x25b   : > { %v616_v28 = vsel %vm615_vm9, -1000000.0, %v608_v26 }
 0x25c   : > { %v619_v29 = vsel %vm618_vm8, %v616_v28, -inf }
 0x25d   : > { %620 = vmax.xlane.f32.xlu1 %v619_v29 }
 0x2ea   : > { %v621_v31 = vpop.xlane.xlu1 %620 }
 0x2eb   : > { %v622_v32 = vmax.f32 %v617_v30, %v621_v31 }
 0x2ed   : > { %v623_v33 = vsub.f32 %v617_v30, %v622_v32  ;;  %731 = vst.msk [vmem:[#allocation2] sm:$0x3] %vm357_vm7, %v622_v32  ;;  %628 = vperm.xlu1 %988, %v622_v32  }
 0x2ef   : > { %v624_v34 = vmul.f32 1.442695, %v623_v33 }
 0x2f1   : > { %991 = vpow2.f32 %v624_v34 }
 0x2fb   : > { %v992_v38 = vpop.eup %991 }
 0x2fc   : > { %645 = vperm.xlu1 %988, %v992_v38   ;;  %v635_v45 = vmul.f32 %v992_v38, %v634_v44 }
 0x36c   : > { %v629_v39 = vpop.permute.xlu1 %628 }
 0x36d   : > { %v631_v40 = vsub.f32 %v616_v28, %v629_v39 }
 0x36f   : > { %v632_v41 = vmul.f32 1.442695, %v631_v40 }
 0x371   : > { %993 = vpow2.f32 %v632_v41 }
 0x37b   : > { %v994_v42 = vpop.eup %993  ;;  %v646_v51 = vpop.permute.xlu1 %645 }
 0x37c   : > { %916 = vmatmul.mubr.msk.f32.vlgmr.msra.gmra.mrb[2].mxu0 %vm651_vm13, %v994_v42  ;;  %v636_v43 = vsel %vm618_vm8, %v994_v42, 0.0  ;;  %v648_v52 = vmul.f32 %v646_v51, %v642_v50 }
 0x37d   : > { %637 = vadd.xlane.f32.xlu0 %v636_v43 }
 0x40a   : > { %v638_v46 = vpop.xlane.xlu0 %637 }
 0x40b   : > { %v639_v47 = vadd.f32 %v638_v46, %v635_v45 }
 0x40d   : > { %641 = vst.msk [vmem:[#allocation3] sm:$0x3] %vm357_vm7, %v639_v47 }
 0x414   : > { %v735_v48 = vld [vmem:[#allocation3] sm:$0x3] }
 0x415   : > { %995 = vrcp.f32 %v735_v48 }
 0x41f   : > { %v996_v49 = vpop.eup %995 }
 0x420   : > { %740 = vperm.xlu1 %988, %v996_v49  }
 0x44f   : > { %v724_v53 = vpop.f32.mrb[2].mxu0 }
 0x450   : > { %v728_v54 = vadd.f32 %v724_v53, %v648_v52  ;;  %v917_v55 = vpop.f32.mrb[3].mxu0 }
 0x452   : > { %730 = vst.msk [vmem:[#allocation4] sm:$0x3] %vm360_vm10, %v728_v54 }
 0x459   : > { %v737_v57 = vld [vmem:[#allocation4] sm:$0x3] }
 0x49f   : > { %v741_v56 = vpop.permute.xlu1 %740 }
 0x4a0   : > { %v743_v58 = vmul.f32 %v741_v56, %v737_v57 }
 0x4a2   : > { %744 = vst.msk [vmem:[%s330_s10] sm:$0x3] %vm360_vm10, %v743_v58 }
 0x4a3   : > { %1010 = shalt.err (!%p1007_p5)
}
 0x4a4   : > { %s1011_s23 = scalar_lea.hbm %s1235_s18, 32  ;;  %s1015_s8 = scalar_lea.hbm %s1290_s7, 64 }
 0x4a5   : > { %p1012_p6 = scmp.ne.s32.totalorder %s1235_s18, %s1011_s23  ;;  %p1016_p10 = scmp.lt.u32.totalorder %s1235_s18, %s1290_s7 }
 0x4a6   : > { %p1017_p11 = scmp.lt.u32.totalorder %s1015_s8, %s1011_s23  ;;  %p1019_p13 = scmp.lt.u32.totalorder %s1011_s23, %s1235_s18 }
 0x4a7   : > { %p1013_p7 = pnand %p1012_p6, %p1164_p4 }
 0x4a8   : > { %p1018_p12 = por %p1017_p11, %p1016_p10 }
 0x4a9   : > { %p1014_p9 = pneg %p1013_p7 }
 0x4aa   : > { %p1020_p0 = por %p1019_p13, %p1018_p12 }
 0x4ac   : > { %p1021_p1 = pnand %p1020_p0, %p1014_p9 }
 0x4ae   : > { %1024 = shalt.err (!%p1021_p1)
}
 0x4af   : > { %926 = dma.vmem_to_hbm [thread:$0]  (%p1164_p4), %s1237_s12, 32, %s1235_s18, %s746_s19  }
 0x4b0 PF: > { %p932_p2 = scmp.ge.s32.totalorder %s1075_s29, 2  ;;  %s771_s17 = sand.u32 1, %s1055_s24  }
 0x4b1   : > { %s772_s20 = scalar_lea.sflag [#allocation6], %s771_s17 }
 0x4b2   : > { %p929_p3 = pnand %p932_p2, %p1171_p8 }
 0x4b4   : > { %1050 = dma.done.wait (!%p929_p3), %s772_s20, 32  }
 0x4b5   : > { %1052 = vsyncadd (!%p929_p3), %s772_s20, 4294967264  ;;  %s20_s29 = sadd.s32 1, %s1075_s29   ;;  %s1293_s24 = smov %s1059_s25 }
 0x4b6   : > { %p17_p5 = scmp.ge.s32.totalorder %s20_s29, 4   ;;  %s1294_s25 = smov %s1063_s26 }
 0x4b7   : > { %s1295_s26 = smov %s1177_s14  ;;  %s1296_s27 = smov %s1071_s28 }
 0x4b8   : > { %s1297_s28 = smov %s1299_s9  ;;  %19 = sbr.rel (!%p17_p5) target bundleno = 4 (0x4), region = 97 }
 0x4bf   :  { %777 = vsyncpa [#allocation6], 1 }
 0x4c0   :  { %779 = vsyncpa [#allocation6 + $0x1], 1 }

</bundles_post_ra>
